<compile_context>
chip_gen: v6e
topology: v6e:2x2x1
jax: 0.10.0
libtpu: 0.0.40
codegen_flags: <defaults>
</compile_context>

<pallas_src>
import functools

import jax
import jax.numpy as jnp
from jax import lax
from jax.experimental import pallas as pl
from jax.experimental.pallas import tpu as pltpu

_LANE = 128
_SUBLANE = 8


def _round_up(n, m):
    return ((n + m - 1) // m) * m


def _glm_fused_kernel(x_ref, w_ref, b_ref, out_ref, *, d_out):
    # x: [tm, D_in] (f32 or bf16), w: [D_in, N_pad], b: [1, N_pad] f32
    x = x_ref[...]
    y = jnp.dot(x, w_ref[...], preferred_element_type=jnp.float32)  # single MXU push
    y = y + b_ref[...]
    y = jnp.clip(y, -10.0, 10.0)
    # Columns [0, d_out)       -> scores = clamp(x @ W1 + b1)
    # Columns [d_out, 2*d_out) -> alphas = exp(clamp(x @ W2 + b2)) + 1e-6
    # Columns >= 2*d_out are zero padding (sliced off in the wrapper).
    col = lax.broadcasted_iota(jnp.int32, y.shape, dimension=1)
    is_alpha = (col >= d_out) & (col < 2 * d_out)
    out_ref[...] = jnp.where(is_alpha, jnp.exp(y) + 1e-6, y)


def glm_forward(x, w1, b1, w2, b2, *, tm=None, use_bf16=False):
    """x: [B, D_in]; w*: [D_in, D_out]; b*: [1, D_out] or [D_out].

    Returns (scores, alphas), each [B, D_out] float32.
    """
    B, D_in = x.shape
    D_out = w1.shape[1]
    N = 2 * D_out
    N_pad = _round_up(N, _LANE)

    # Fuse the two heads into one lane-dense weight / bias (wrapper-side layout
    # plumbing; cheap, done once under jit).
    w = jnp.concatenate([w1, w2], axis=1)
    b = jnp.concatenate([jnp.reshape(b1, (1, -1)), jnp.reshape(b2, (1, -1))], axis=1)
    if N_pad > N:
        w = jnp.pad(w, ((0, 0), (0, N_pad - N)))
        b = jnp.pad(b, ((0, 0), (0, N_pad - N)))

    # Row-tile choice: small batches -> one block; large batches -> 512-row
    # tiles so the grid has many steps (pipelining + multi-TC sharding).
    if tm is None:
        tm = min(512, _round_up(B, _SUBLANE))
    tm = max(_SUBLANE, _round_up(tm, _SUBLANE))
    B_pad = _round_up(B, tm)
    if B_pad > B:
        x = jnp.pad(x, ((0, B_pad - B), (0, 0)))

    in_dtype = jnp.bfloat16 if use_bf16 else jnp.float32
    x_in = x.astype(in_dtype)
    w_in = w.astype(in_dtype)
    b_in = b.astype(jnp.float32)  # bias + epilogue stay in f32 (v5e has no bf16 VPU/EUP)

    grid = (B_pad // tm,)

    # Explicit VMEM budget: double-buffered x and output tiles + resident
    # weights/bias, with 2x headroom, clamped to be safe on v7x's 64 MiB VMEM.
    isz = jnp.dtype(in_dtype).itemsize
    vmem_bytes = (
        2 * tm * D_in * isz        # x tiles (double-buffered)
        + 2 * D_in * N_pad * isz   # fused weight (buffer pair)
        + 2 * N_pad * 4            # bias
        + 2 * tm * N_pad * 4       # output tiles (double-buffered)
    )
    vmem_limit = int(min(48 * 2**20, max(16 * 2**20, 2 * vmem_bytes)))

    out = pl.pallas_call(
        functools.partial(_glm_fused_kernel, d_out=D_out),
        out_shape=jax.ShapeDtypeStruct((B_pad, N_pad), jnp.float32),
        grid_spec=pl.GridSpec(
            grid=grid,
            in_specs=[
                pl.BlockSpec((tm, D_in), lambda i: (i, 0)),
                pl.BlockSpec((D_in, N_pad), lambda i: (0, 0)),  # weights resident
                pl.BlockSpec((1, N_pad), lambda i: (0, 0)),
            ],
            out_specs=pl.BlockSpec((tm, N_pad), lambda i: (i, 0)),
        ),
        compiler_params=pltpu.CompilerParams(
            dimension_semantics=("parallel",),
            vmem_limit_bytes=vmem_limit,
        ),
    )(x_in, w_in, b_in)

    scores = out[:B, :D_out]
    alphas = out[:B, D_out:N]
    return scores, alphas


def init_glm_params(key, input_size, output_size):
    """Deterministic init matching PyTorch nn.Linear's U(-1/sqrt(fan_in), +1/sqrt(fan_in))."""
    k1, k2, k3, k4 = jax.random.split(key, 4)
    bound = 1.0 / jnp.sqrt(jnp.float32(input_size))
    w1 = jax.random.uniform(k1, (input_size, output_size), jnp.float32, -bound, bound)
    b1 = jax.random.uniform(k2, (1, output_size), jnp.float32, -bound, bound)
    w2 = jax.random.uniform(k3, (input_size, output_size), jnp.float32, -bound, bound)
    b2 = jax.random.uniform(k4, (1, output_size), jnp.float32, -bound, bound)
    return w1, b1, w2, b2


def _reference(x, w1, b1, w2, b2):
    s = jnp.clip(x @ w1 + b1, -10.0, 10.0)
    a = jnp.exp(jnp.clip(x @ w2 + b2, -10.0, 10.0)) + 1e-6
    return s, a


if __name__ == "__main__":
    key = jax.random.PRNGKey(0)
    kx, kp, kx2 = jax.random.split(key, 3)

    # ---- small module-sized test (8 x 32 -> 16) --------------------------
    B, D_in, D_out = 8, 32, 16
    x = jax.random.normal(kx, (B, D_in), jnp.float32)
    w1, b1, w2, b2 = init_glm_params(kp, D_in, D_out)

    scores, alphas = glm_forward(x, w1, b1, w2, b2)
    jax.block_until_ready((scores, alphas))

    s_ref, a_ref = _reference(x, w1, b1, w2, b2)
    assert scores.shape == (B, D_out) and alphas.shape == (B, D_out)
    assert jnp.allclose(scores, s_ref, atol=1e-5, rtol=1e-5)
    assert jnp.allclose(alphas, a_ref, atol=1e-5, rtol=1e-5)
    assert bool(jnp.all(alphas > 0.0))

    # ---- larger batch: exercises multi-step grid (tm=256, pipelined) -----
    B2 = 1000  # non-multiple of tile -> padded to 1024, grid=(4,)
    x2 = jax.random.normal(kx2, (B2, D_in), jnp.float32)
    scores2, alphas2 = glm_forward(x2, w1, b1, w2, b2, tm=256)
    jax.block_until_ready((scores2, alphas2))
    s2_ref, a2_ref = _reference(x2, w1, b1, w2, b2)
    assert scores2.shape == (B2, D_out) and alphas2.shape == (B2, D_out)
    assert jnp.allclose(scores2, s2_ref, atol=1e-5, rtol=1e-5)
    assert jnp.allclose(alphas2, a2_ref, atol=1e-5, rtol=1e-5)

    # ---- bf16 MXU-input path (f32 accumulate + f32 epilogue) -------------
    scores3, alphas3 = glm_forward(x2, w1, b1, w2, b2, tm=256, use_bf16=True)
    jax.block_until_ready((scores3, alphas3))
    assert jnp.allclose(scores3, s2_ref, atol=5e-2, rtol=5e-2)
    assert jnp.allclose(alphas3, a2_ref, atol=5e-2, rtol=5e-2)
    assert bool(jnp.all(alphas3 > 0.0))

    print("KERNEL_OK")
</pallas_src>

<mosaic_0001>
module attributes {stable_mosaic.version = 11 : i64} {
  func.func @_glm_fused_kernel(%arg0: i32, %arg1: memref<8x32xf32, #tpu.memory_space<vmem>>, %arg2: memref<32x128xf32, #tpu.memory_space<vmem>>, %arg3: memref<1x128xf32, #tpu.memory_space<vmem>>, %arg4: memref<8x128xf32, #tpu.memory_space<vmem>>) attributes {dimension_semantics = [#tpu.dimension_semantics<parallel>], iteration_bounds = array<i64: 1>, scalar_prefetch = 0 : i64, scratch_operands = 0 : i64, tpu.core_type = #tpu.core_type<tc>, window_params = [{transform_indices = @transform_0, window_bounds = array<i64: 8, 32>}, {pipeline_mode = #tpu.pipeline_mode<synchronous>, transform_indices = @transform_1, window_bounds = array<i64: 32, 128>}, {pipeline_mode = #tpu.pipeline_mode<synchronous>, transform_indices = @transform_2, window_bounds = array<i64: 1, 128>}, {transform_indices = @transform_3, window_bounds = array<i64: 8, 128>}]} {
    %c0 = arith.constant 0 : index
    %c0_0 = arith.constant 0 : index
    %0 = vector.load %arg1[%c0, %c0_0] : memref<8x32xf32, #tpu.memory_space<vmem>>, vector<8x32xf32>
    %c0_1 = arith.constant 0 : index
    %c0_2 = arith.constant 0 : index
    %1 = vector.load %arg2[%c0_1, %c0_2] : memref<32x128xf32, #tpu.memory_space<vmem>>, vector<32x128xf32>
    %cst = arith.constant dense<0.000000e+00> : vector<8x128xf32>
    %2 = tpu.matmul %0, %1, %cst {dimension_numbers = #tpu.dot_dimension_numbers<[1], [0], [0], [1], [0, 0, 1, 1], [], []>} : vector<8x32xf32>, vector<32x128xf32>, vector<8x128xf32> -> vector<8x128xf32>
    %c0_3 = arith.constant 0 : index
    %c0_4 = arith.constant 0 : index
    %3 = vector.load %arg3[%c0_3, %c0_4] : memref<1x128xf32, #tpu.memory_space<vmem>>, vector<1x128xf32>
    %4 = vector.broadcast %3 : vector<1x128xf32> to vector<8x128xf32>
    %5 = arith.addf %2, %4 : vector<8x128xf32>
    %cst_5 = arith.constant -1.000000e+01 : f32
    %cst_6 = arith.constant 1.000000e+01 : f32
    %6 = vector.broadcast %cst_5 : f32 to vector<8x128xf32>
    %7 = arith.maximumf %6, %5 : vector<8x128xf32>
    %8 = vector.broadcast %cst_6 : f32 to vector<8x128xf32>
    %9 = arith.minimumf %8, %7 : vector<8x128xf32>
    %10 = tpu.iota {dimensions = array<i32: 1>} : vector<8x128xi32>
    %c16_i32 = arith.constant 16 : i32
    %11 = vector.broadcast %c16_i32 : i32 to vector<8x128xi32>
    %12 = arith.cmpi sge, %10, %11 : vector<8x128xi32>
    %c32_i32 = arith.constant 32 : i32
    %13 = vector.broadcast %c32_i32 : i32 to vector<8x128xi32>
    %14 = arith.cmpi slt, %10, %13 : vector<8x128xi32>
    %15 = arith.andi %12, %14 : vector<8x128xi1>
    %16 = math.exp %9 : vector<8x128xf32>
    %cst_7 = arith.constant 9.99999997E-7 : f32
    %17 = vector.broadcast %cst_7 : f32 to vector<8x128xf32>
    %18 = arith.addf %16, %17 : vector<8x128xf32>
    %19 = arith.select %15, %18, %9 : vector<8x128xi1>, vector<8x128xf32>
    %c0_8 = arith.constant 0 : index
    %c0_9 = arith.constant 0 : index
    %20 = vector.load %arg4[%c0_8, %c0_9] : memref<8x128xf32, #tpu.memory_space<vmem>>, vector<8x128xf32>
    tpu.vector_store %arg4[%c0_8, %c0_9], %19 {strides = array<i32>} : memref<8x128xf32, #tpu.memory_space<vmem>>, vector<8x128xf32>,
    return
  }
  func.func @transform_0(%arg0: i32) -> (i32, i32) {
    %c0_i32 = arith.constant 0 : i32
    %c0_i32_0 = arith.constant 0 : i32
    return %arg0, %c0_i32 : i32, i32
  }
  func.func @transform_1(%arg0: i32) -> (i32, i32) {
    %c0_i32 = arith.constant 0 : i32
    %c0_i32_0 = arith.constant 0 : i32
    %c0_i32_1 = arith.constant 0 : i32
    return %c0_i32, %c0_i32_0 : i32, i32
  }
  func.func @transform_2(%arg0: i32) -> (i32, i32) {
    %c0_i32 = arith.constant 0 : i32
    %c0_i32_0 = arith.constant 0 : i32
    %c0_i32_1 = arith.constant 0 : i32
    return %c0_i32, %c0_i32_0 : i32, i32
  }
  func.func @transform_3(%arg0: i32) -> (i32, i32) {
    %c0_i32 = arith.constant 0 : i32
    %c0_i32_0 = arith.constant 0 : i32
    return %arg0, %c0_i32 : i32, i32
  }
}

</mosaic_0001>

<bundles_post_ra>
// kernel: tpu_custom_call.1
= control target key start
LH: loop header
LB: loop body
LE: loop exit
PB: predicated region body
PF: predicated region fallthrough
CT: control target
= control target key end

     0   :  { %8 = vsyncpa [#allocation3], 0  ;;  %s288_s0 = inlined_call_operand.hbm [shape: f32[8,32], index: 0, kind: input, shape index: {}]   ;;  %s289_s1 = inlined_call_operand.hbm [shape: f32[32,128], index: 1, kind: input, shape index: {}]   ;;  %s290_s2 = inlined_call_operand.vmem [shape: f32[1,128], index: 2, kind: input, shape index: {}]   ;;  %s291_s3 = inlined_call_operand.hbm [shape: f32[8,128], index: 3, kind: output, shape index: {}]  }
   0x1   :  { %9 = vsyncpa [#allocation6], 0 }
   0x2   :  { %10 = vsyncpa [#allocation4], 0  ;;  %s249_s12 = smov [#allocation2]   ;;  %s250_s14 = smov [#allocation5]  }
   0x3   :  { %s17_s13 = sshll.u32 %s249_s12, 4  ;;  %s26_s15 = sshll.u32 %s250_s14, 4  ;;  %s18_s13 = int_to_ptr.vmem [resolvable:$true] %s17_s13  ;;  %s27_s15 = int_to_ptr.vmem [resolvable:$true] %s26_s15 }
   0x4   :  { %s191_s16 = scalar_lea.vmem %s18_s13, 128  ;;  %p196_p1 = scmp.lt.s32.totalorder %s18_s13, %s18_s13 }
   0x5   :  { %p192_p0 = scmp.ne.s32.totalorder %s18_s13, %s191_s16  ;;  %p197_p2 = scmp.lt.s32.totalorder %s191_s16, %s191_s16 }
   0x7   :  { %p198_p3 = por %p197_p2, %p196_p1 }
   0x9   :  { %p199_p4 = pnand %p198_p3, %p192_p0 }
   0xb   :  { %202 = shalt.err (!%p199_p4)
}
   0xc   :  { %20 = dma.hbm_to_vmem [thread:$0]  %s288_s0, 128, %s18_s13, [#allocation3]  }
   0xd   :  { %s211_s19 = scalar_lea.vmem %s27_s15, 512  ;;  %p216_p6 = scmp.lt.s32.totalorder %s27_s15, %s27_s15 }
   0xe   :  { %p212_p5 = scmp.ne.s32.totalorder %s27_s15, %s211_s19  ;;  %p217_p7 = scmp.lt.s32.totalorder %s211_s19, %s211_s19 }
  0x10   :  { %p218_p8 = por %p217_p7, %p216_p6 }
  0x12   :  { %p219_p9 = pnand %p218_p8, %p212_p5 }
  0x14   :  { %222 = shalt.err (!%p219_p9)
}
  0x15   :  { %s251_s20 = smov 128   ;;  %s252_s21 = smov 8  }
  0x16   :  { %32 = dma.hbm_to_vmem [thread:$0]  %s289_s1, 512, %s27_s15, [#allocation6], %s251_s20, %s251_s20, %s252_s21  }
  0x17   :  { %243 = dma.done.wait [#allocation3], 128  }
  0x18   :  { %244 = vsyncadd [#allocation3], 4294967168 }
  0x19   :  { %245 = dma.done.wait [#allocation6], 512  }
  0x1a   :  { %246 = vsyncadd [#allocation6], 4294966784  ;;  %v253_v0 = vmov 0.0   ;;  %vm254_vm0 = vmmov 0   ;;  %v45_v1 = vld [vmem:[#allocation5 + $0x18] sm:$0xff]  ;;  %v44_v2 = vld [vmem:[#allocation5 + $0x10] sm:$0xff]  ;;  %v129_v12 = vlaneseq }
  0x1b   :  { %163 = vmatprep.subr.mxu0 %v253_v0  ;;  %171 = vmatprep.mubr.msk.f32.mxu0 %vm254_vm0, %v253_v0  ;;  %v43_v3 = vld [vmem:[#allocation5 + $0x8] sm:$0xff]  ;;  %v42_v4 = vld [vmem:[#allocation5] sm:$0xff]  ;;  %v41_v5 = vld [vmem:[#allocation2] sm:$0xff]  ;;  %vm53_vm1 = vcmask 261120   ;;  %s255_s24 = smov [#allocation7]  }
  0x1c   :  { %164 = vmatpush3.msra.mxu0 %v45_v1  ;;  %v155_v6 = vld [vmem:[%s290_s2] ss:$0 sm:$0xff]  ;;  %v130_v13 = vand.u32 127, %v129_v12  ;;  %s145_s25 = sshll.u32 %s255_s24, 4  ;;  %s146_s25 = int_to_ptr.vmem [resolvable:$true] %s145_s25 }
  0x1d   :  { %165 = vmatprep.subr.mxu0 %v253_v0  ;;  %s223_s26 = scalar_lea.vmem %s146_s25, 128  ;;  %p228_p11 = scmp.lt.s32.totalorder %s146_s25, %s146_s25 }
  0x1e   :  { %166 = vmatpush3.msra.mxu0 %v44_v2  ;;  %vm131_vm2 = vcmp.ge.s32.totalorder %v130_v13, 16  ;;  %vm132_vm3 = vcmp.lt.s32.totalorder %v130_v13, 32  ;;  %p224_p10 = scmp.ne.s32.totalorder %s146_s25, %s223_s26  ;;  %p229_p12 = scmp.lt.s32.totalorder %s223_s26, %s223_s26 }
  0x1f   :  { %167 = vmatprep.subr.mxu0 %v253_v0  ;;  %vm133_vm4 = vmand %vm131_vm2, %vm132_vm3 }
  0x20   :  { %168 = vmatpush3.msra.mxu0 %v43_v3  ;;  %p230_p13 = por %p229_p12, %p228_p11 }
  0x21   :  { %169 = vmatprep.subr.mxu0 %v253_v0 }
  0x22   :  { %170 = vmatpush3.msra.mxu0 %v42_v4  ;;  %p231_p0 = pnand %p230_p13, %p224_p10 }
  0x23   :  { %172 = vmatmul.mubr.msk.f32.vlgmr.msra.gmra.mxu0 %vm53_vm1, %v41_v5 }
  0xe3   :  { %v123_v7 = vpop.f32.mrf.mxu0 }
  0xe4   :  { %v124_v8 = vadd.f32 %v155_v6, %v123_v7 }
  0xe5   :  { %v173_v9 = vpop.f32.mrf.mxu0 }
  0xe6   :  { %v157_v10 = vclamps-f32 %v124_v8, 10.0 }
  0xe8   :  { %v134_v11 = vmul.f32 1.442695, %v157_v10 }
  0xea   :  { %181 = vpow2.f32 %v134_v11 }
  0xf7   :  { %v182_v14 = vpop.eup %181 }
  0xf8   :  { %v136_v15 = vadd.f32 1e-06, %v182_v14 }
  0xfa   :  { %v137_v16 = vsel %vm133_vm4, %v136_v15, %v157_v10 }
  0xfb   :  { %138 = vst [vmem:[#allocation7] sm:$0xff] %v137_v16 }
  0xfc   :  { %234 = shalt.err (!%p231_p0)
}
  0xfd   :  { %148 = dma.vmem_to_hbm [thread:$0]  %s146_s25, 128, %s291_s3, [#allocation4]  }
  0xfe   :  { %247 = dma.done.wait [#allocation4], 128  }
  0xff   :  { %248 = vsyncadd [#allocation4], 4294967168 }
 0x100   :  { %152 = vsyncpa [#allocation3], 1 }
 0x101   :  { %153 = vsyncpa [#allocation6], 1 }
 0x102   :  { %154 = vsyncpa [#allocation4], 1 }

</bundles_post_ra>
